<compile_context>
chip_gen: v7x
topology: tpu7x:2x2x1
jax: 0.10.0
libtpu: 0.0.40
codegen_flags: <defaults>
</compile_context>

<pallas_src>
import jax
import jax.numpy as jnp
from jax.experimental import pallas as pl
from jax.experimental.pallas import tpu as pltpu

_LANE_CHUNK = 1024   # class-axis chunk (multiple of 128)
_MAX_CHUNKS = 32     # bound on unrolled chunk iterations


def _round_up(x, m):
    return (x + m - 1) // m * m


def _sublane_multiple(dtype):
    return {4: 8, 2: 16, 1: 32}.get(jnp.dtype(dtype).itemsize, 8)


def _make_kernel(chunks, compute_dtype):
    """chunks: static tuple of (start, size) covering the class axis."""

    def kernel(logits_ref, targets_ref, out_ref, loss_acc, cnt_acc):
        w = pl.program_id(1)

        # ---- init per-instance accumulators at the first W tile -------------
        @pl.when(w == 0)
        def _():
            loss_acc[...] = jnp.zeros_like(loss_acc)
            cnt_acc[...] = jnp.zeros_like(cnt_acc)

        tgt = targets_ref[...]                              # (1, WT, 1) int32
        valid = tgt != 0                                    # ignore_index == 0

        # ---- pass 1: per-row max over classes (chunked along lanes) ---------
        m = jnp.full(tgt.shape, -jnp.inf, compute_dtype)    # (1, WT, 1)
        for start, size in chunks:
            xk = logits_ref[:, :, start:start + size].astype(compute_dtype)
            m = jnp.maximum(m, jnp.max(xk, axis=-1, keepdims=True))

        # ---- pass 2 (fused): exp-sum for lse AND one-hot target gather ------
        sum_exp = jnp.zeros(tgt.shape, jnp.float32)         # (1, WT, 1)
        x_tgt = jnp.zeros(tgt.shape, jnp.float32)           # (1, WT, 1)
        for start, size in chunks:
            xk = logits_ref[:, :, start:start + size].astype(compute_dtype)
            sum_exp = sum_exp + jnp.sum(
                jnp.exp(xk - m).astype(jnp.float32), axis=-1, keepdims=True)
            ids = jax.lax.broadcasted_iota(jnp.int32, xk.shape, 2) + start
            x_tgt = x_tgt + jnp.sum(
                jnp.where(ids == tgt, xk.astype(jnp.float32), 0.0),
                axis=-1, keepdims=True)

        lse = m.astype(jnp.float32) + jnp.log(sum_exp)      # (1, WT, 1)

        # jnp.where (not multiply-by-mask): the ragged last W tile contains
        # garbage rows whose lse/x_tgt may be Inf/NaN; select drops them.
        tok_loss = jnp.where(valid, lse - x_tgt, 0.0)
        tok_cnt = valid.astype(jnp.float32)

        loss_acc[...] += jnp.sum(tok_loss, axis=1, keepdims=True)   # (1,1,1)
        cnt_acc[...] += jnp.sum(tok_cnt, axis=1, keepdims=True)     # (1,1,1)

        # ---- finalize: single store per instance -----------------------------
        @pl.when(w == pl.num_programs(1) - 1)
        def _():
            # 0/0 -> NaN for instances with zero non-padding tokens, matching
            # the PyTorch reference semantics.
            out_ref[...] = loss_acc[...] / cnt_acc[...]

    return kernel


def suffix_length_normalized_cce(logits, targets, *,
                                 block_bytes=4 * 1024 * 1024,
                                 compute_dtype=jnp.float32):
    """logits: (B, W, C) float; targets: (B, W) int. Returns (B,) float32."""
    B, W, C = logits.shape
    targets = targets.astype(jnp.int32)
    itemsize = jnp.dtype(logits.dtype).itemsize

    # --- W tile: native sublane multiple; budget covers logits block AND the
    #     lane-padded (wt, 128) int32 target block (double-buffered later) ----
    sub = _sublane_multiple(logits.dtype)
    logit_row_bytes = C * itemsize
    tgt_row_bytes = 128 * 4                      # (1, wt, 1) int32 pads lanes to 128
    wt = (block_bytes // (logit_row_bytes + tgt_row_bytes)) // sub * sub
    wt = max(sub, wt)
    wt = min(wt, _round_up(W, sub))

    num_w = pl.cdiv(W, wt)
    Wp = num_w * wt

    # Only the cheap integer targets are padded (pad value 0 == ignore_index);
    # the big logits tensor is streamed as-is, ragged tail masked in-kernel.
    if Wp != W:
        targets = jnp.pad(targets, ((0, 0), (0, Wp - W)))
    targets3 = targets[..., None]                # (B, Wp, 1)

    # --- class-axis chunking: bounded unroll, chunk-sized temporaries --------
    if C <= _LANE_CHUNK:
        c_chunk = C
    else:
        c_chunk = max(_LANE_CHUNK, _round_up(-(-C // _MAX_CHUNKS), 128))
    chunks = tuple((s, min(c_chunk, C - s)) for s in range(0, C, c_chunk))

    # --- explicit VMEM budget -------------------------------------------------
    logits_block_bytes = wt * C * itemsize
    tgt_block_bytes = wt * 128 * 4
    chunk_f32_bytes = wt * c_chunk * 4
    vmem_est = (2 * (logits_block_bytes + tgt_block_bytes)   # double-buffered IO
                + 6 * chunk_f32_bytes                        # in-body temporaries
                + (2 << 20))                                 # headroom
    vmem_limit = int(min(max(vmem_est, 32 << 20), 56 << 20))

    cost = pl.CostEstimate(
        flops=5 * B * W * C,
        transcendentals=B * W * C,
        bytes_accessed=logits.size * itemsize + targets3.size * 4 + B * 4)

    out = pl.pallas_call(
        _make_kernel(chunks, compute_dtype),
        out_shape=jax.ShapeDtypeStruct((B, 1, 1), jnp.float32),
        grid_spec=pltpu.PrefetchScalarGridSpec(
            num_scalar_prefetch=0,
            grid=(B, num_w),
            in_specs=[
                pl.BlockSpec((1, wt, C), lambda b, w: (b, w, 0)),   # logits tile
                pl.BlockSpec((1, wt, 1), lambda b, w: (b, w, 0)),   # targets tile
            ],
            out_specs=pl.BlockSpec((1, 1, 1), lambda b, w: (b, 0, 0)),
            scratch_shapes=[pltpu.VMEM((1, 1, 1), jnp.float32),     # loss sum
                            pltpu.VMEM((1, 1, 1), jnp.float32)],    # token count
        ),
        compiler_params=pltpu.CompilerParams(
            dimension_semantics=("parallel", "arbitrary"),
            vmem_limit_bytes=vmem_limit),
        cost_estimate=cost,
    )(logits, targets3)
    return out.reshape(B)


def _reference(logits, targets):
    # pure-JAX mirror of nn.CrossEntropyLoss(reduction='none', ignore_index=0)
    logp = jax.nn.log_softmax(logits.astype(jnp.float32), axis=-1)
    tok = -jnp.take_along_axis(logp, targets[..., None].astype(jnp.int32), axis=-1)[..., 0]
    mask = (targets != 0).astype(jnp.float32)
    tok = tok * mask
    return jnp.sum(tok, axis=-1) / jnp.sum(mask, axis=-1)


if __name__ == "__main__":
    B, W, C = 2, 13, 16  # batch, window_size (deliberately not a multiple of 8), num_classes

    key = jax.random.PRNGKey(0)
    k_logits, k_tgt = jax.random.split(key)

    logits = jax.random.normal(k_logits, (B, W, C), dtype=jnp.float32)
    targets = jax.random.randint(k_tgt, (B, W), 0, C, dtype=jnp.int32)
    # guarantee every instance has at least one non-padding token
    targets = targets.at[:, 0].set(1)

    ref = _reference(logits, targets)

    # 1) default block budget: single ragged W tile per instance (wt=16 > W=13)
    out1 = jax.block_until_ready(suffix_length_normalized_cce(logits, targets))
    assert out1.shape == (B,) and out1.dtype == jnp.float32
    assert jnp.allclose(out1, ref, rtol=1e-5, atol=1e-5), (out1, ref)

    # 2) tiny block budget -> wt=8, 2 W tiles: exercises init / accumulate /
    #    finalize plus the masked ragged tail without any logits padding.
    out2 = jax.block_until_ready(
        suffix_length_normalized_cce(logits, targets, block_bytes=8 * C * 4))
    assert jnp.allclose(out2, ref, rtol=1e-5, atol=1e-5), (out2, ref)

    print("KERNEL_OK")
</pallas_src>

<mosaic_0001>
module attributes {stable_mosaic.version = 11 : i64} {
  func.func @kernel(%arg0: i32, %arg1: i32, %arg2: memref<1x16x16xf32, #tpu.memory_space<vmem>>, %arg3: memref<1x16x1xi32, #tpu.memory_space<vmem>>, %arg4: memref<1x1x1xf32, #tpu.memory_space<vmem>>, %arg5: memref<1x1x1xf32, #tpu.memory_space<vmem>>, %arg6: memref<1x1x1xf32, #tpu.memory_space<vmem>>) attributes {dimension_semantics = [#tpu.dimension_semantics<parallel>, #tpu.dimension_semantics<arbitrary>], iteration_bounds = array<i64: 2, 1>, scalar_prefetch = 0 : i64, scratch_operands = 2 : i64, tpu.core_type = #tpu.core_type<tc>, window_params = [{transform_indices = @transform_0, window_bounds = array<i64: 1, 16, 16>}, {transform_indices = @transform_1, window_bounds = array<i64: 1, 16, 1>}, {transform_indices = @transform_2, window_bounds = array<i64: 1, 1, 1>}]} {
    %c0_i32 = arith.constant 0 : i32
    %0 = arith.cmpi eq, %arg1, %c0_i32 : i32
    %1 = arith.extui %0 : i1 to i32
    %c0_i32_0 = arith.constant 0 : i32
    %2 = arith.cmpi ne, %1, %c0_i32_0 : i32
    scf.if %2 {
      %cst_34 = arith.constant 0.000000e+00 : f32
      %50 = vector.broadcast %cst_34 : f32 to vector<1x1x1xf32>
      %c0_35 = arith.constant 0 : index
      %c0_36 = arith.constant 0 : index
      %c0_37 = arith.constant 0 : index
      %51 = vector.load %arg5[%c0_35, %c0_36, %c0_37] : memref<1x1x1xf32, #tpu.memory_space<vmem>>, vector<1x1x1xf32>
      tpu.vector_store %arg5[%c0_35, %c0_36, %c0_37], %50 {strides = array<i32>} : memref<1x1x1xf32, #tpu.memory_space<vmem>>, vector<1x1x1xf32>,
      %cst_38 = arith.constant 0.000000e+00 : f32
      %52 = vector.broadcast %cst_38 : f32 to vector<1x1x1xf32>
      %c0_39 = arith.constant 0 : index
      %c0_40 = arith.constant 0 : index
      %c0_41 = arith.constant 0 : index
      %53 = vector.load %arg6[%c0_39, %c0_40, %c0_41] : memref<1x1x1xf32, #tpu.memory_space<vmem>>, vector<1x1x1xf32>
      tpu.vector_store %arg6[%c0_39, %c0_40, %c0_41], %52 {strides = array<i32>} : memref<1x1x1xf32, #tpu.memory_space<vmem>>, vector<1x1x1xf32>,
    } else {
    }
    %c0 = arith.constant 0 : index
    %c0_1 = arith.constant 0 : index
    %c0_2 = arith.constant 0 : index
    %3 = vector.load %arg3[%c0, %c0_1, %c0_2] : memref<1x16x1xi32, #tpu.memory_space<vmem>>, vector<1x16x1xi32>
    %c0_i32_3 = arith.constant 0 : i32
    %4 = vector.broadcast %c0_i32_3 : i32 to vector<1x16x1xi32>
    %5 = arith.cmpi ne, %3, %4 : vector<1x16x1xi32>
    %cst = arith.constant 0xFF800000 : f32
    %6 = vector.broadcast %cst : f32 to vector<1x16x1xf32>
    %c0_4 = arith.constant 0 : index
    %c0_5 = arith.constant 0 : index
    %c0_6 = arith.constant 0 : index
    %7 = vector.load %arg2[%c0_4, %c0_5, %c0_6] : memref<1x16x16xf32, #tpu.memory_space<vmem>>, vector<1x16x16xf32>
    %cst_7 = arith.constant dense<0xFF800000> : vector<1x16xf32>
    %8 = vector.multi_reduction <maximumf>, %7, %cst_7 [2] : vector<1x16x16xf32> to vector<1x16xf32>
    %9 = vector.shape_cast %8 : vector<1x16xf32> to vector<1x16x1xf32>
    %10 = arith.maximumf %6, %9 : vector<1x16x1xf32>
    %cst_8 = arith.constant 0.000000e+00 : f32
    %11 = vector.broadcast %cst_8 : f32 to vector<1x16x1xf32>
    %cst_9 = arith.constant 0.000000e+00 : f32
    %12 = vector.broadcast %cst_9 : f32 to vector<1x16x1xf32>
    %c0_10 = arith.constant 0 : index
    %c0_11 = arith.constant 0 : index
    %c0_12 = arith.constant 0 : index
    %13 = vector.load %arg2[%c0_10, %c0_11, %c0_12] : memref<1x16x16xf32, #tpu.memory_space<vmem>>, vector<1x16x16xf32>
    %14 = vector.broadcast %10 : vector<1x16x1xf32> to vector<1x16x16xf32>
    %15 = arith.subf %13, %14 : vector<1x16x16xf32>
    %16 = math.exp %15 : vector<1x16x16xf32>
    %cst_13 = arith.constant dense<0.000000e+00> : vector<1x16xf32>
    %17 = vector.multi_reduction <add>, %16, %cst_13 [2] : vector<1x16x16xf32> to vector<1x16xf32>
    %18 = vector.shape_cast %17 : vector<1x16xf32> to vector<1x16x1xf32>
    %19 = arith.addf %11, %18 : vector<1x16x1xf32>
    %20 = tpu.iota {dimensions = array<i32: 2>} : vector<1x16x16xi32>
    %c0_i32_14 = arith.constant 0 : i32
    %21 = vector.broadcast %c0_i32_14 : i32 to vector<1x16x16xi32>
    %22 = arith.addi %20, %21 : vector<1x16x16xi32>
    %23 = vector.broadcast %3 : vector<1x16x1xi32> to vector<1x16x16xi32>
    %24 = arith.cmpi eq, %22, %23 : vector<1x16x16xi32>
    %cst_15 = arith.constant 0.000000e+00 : f32
    %25 = vector.broadcast %cst_15 : f32 to vector<1x16x16xf32>
    %26 = arith.select %24, %13, %25 : vector<1x16x16xi1>, vector<1x16x16xf32>
    %cst_16 = arith.constant dense<0.000000e+00> : vector<1x16xf32>
    %27 = vector.multi_reduction <add>, %26, %cst_16 [2] : vector<1x16x16xf32> to vector<1x16xf32>
    %28 = vector.shape_cast %27 : vector<1x16xf32> to vector<1x16x1xf32>
    %29 = arith.addf %12, %28 : vector<1x16x1xf32>
    %30 = math.log %19 : vector<1x16x1xf32>
    %31 = arith.addf %10, %30 : vector<1x16x1xf32>
    %32 = arith.subf %31, %29 : vector<1x16x1xf32>
    %cst_17 = arith.constant 0.000000e+00 : f32
    %33 = vector.broadcast %cst_17 : f32 to vector<1x16x1xf32>
    %34 = arith.select %5, %32, %33 : vector<1x16x1xi1>, vector<1x16x1xf32>
    %35 = arith.extui %5 : vector<1x16x1xi1> to vector<1x16x1xi32>
    %36 = arith.sitofp %35 : vector<1x16x1xi32> to vector<1x16x1xf32>
    %c0_18 = arith.constant 0 : index
    %c0_19 = arith.constant 0 : index
    %c0_20 = arith.constant 0 : index
    %37 = vector.load %arg5[%c0_18, %c0_19, %c0_20] : memref<1x1x1xf32, #tpu.memory_space<vmem>>, vector<1x1x1xf32>
    %cst_21 = arith.constant dense<0.000000e+00> : vector<1x1xf32>
    %38 = vector.multi_reduction <add>, %34, %cst_21 [1] : vector<1x16x1xf32> to vector<1x1xf32>
    %39 = vector.shape_cast %38 : vector<1x1xf32> to vector<1x1x1xf32>
    %40 = arith.addf %37, %39 : vector<1x1x1xf32>
    %c0_22 = arith.constant 0 : index
    %c0_23 = arith.constant 0 : index
    %c0_24 = arith.constant 0 : index
    %41 = vector.load %arg5[%c0_22, %c0_23, %c0_24] : memref<1x1x1xf32, #tpu.memory_space<vmem>>, vector<1x1x1xf32>
    tpu.vector_store %arg5[%c0_22, %c0_23, %c0_24], %40 {strides = array<i32>} : memref<1x1x1xf32, #tpu.memory_space<vmem>>, vector<1x1x1xf32>,
    %c0_25 = arith.constant 0 : index
    %c0_26 = arith.constant 0 : index
    %c0_27 = arith.constant 0 : index
    %42 = vector.load %arg6[%c0_25, %c0_26, %c0_27] : memref<1x1x1xf32, #tpu.memory_space<vmem>>, vector<1x1x1xf32>
    %cst_28 = arith.constant dense<0.000000e+00> : vector<1x1xf32>
    %43 = vector.multi_reduction <add>, %36, %cst_28 [1] : vector<1x16x1xf32> to vector<1x1xf32>
    %44 = vector.shape_cast %43 : vector<1x1xf32> to vector<1x1x1xf32>
    %45 = arith.addf %42, %44 : vector<1x1x1xf32>
    %c0_29 = arith.constant 0 : index
    %c0_30 = arith.constant 0 : index
    %c0_31 = arith.constant 0 : index
    %46 = vector.load %arg6[%c0_29, %c0_30, %c0_31] : memref<1x1x1xf32, #tpu.memory_space<vmem>>, vector<1x1x1xf32>
    tpu.vector_store %arg6[%c0_29, %c0_30, %c0_31], %45 {strides = array<i32>} : memref<1x1x1xf32, #tpu.memory_space<vmem>>, vector<1x1x1xf32>,
    %c0_i32_32 = arith.constant 0 : i32
    %47 = arith.cmpi eq, %arg1, %c0_i32_32 : i32
    %48 = arith.extui %47 : i1 to i32
    %c0_i32_33 = arith.constant 0 : i32
    %49 = arith.cmpi ne, %48, %c0_i32_33 : i32
    scf.if %49 {
      %c0_34 = arith.constant 0 : index
      %c0_35 = arith.constant 0 : index
      %c0_36 = arith.constant 0 : index
      %50 = vector.load %arg5[%c0_34, %c0_35, %c0_36] : memref<1x1x1xf32, #tpu.memory_space<vmem>>, vector<1x1x1xf32>
      %c0_37 = arith.constant 0 : index
      %c0_38 = arith.constant 0 : index
      %c0_39 = arith.constant 0 : index
      %51 = vector.load %arg6[%c0_37, %c0_38, %c0_39] : memref<1x1x1xf32, #tpu.memory_space<vmem>>, vector<1x1x1xf32>
      %52 = arith.divf %50, %51 : vector<1x1x1xf32>
      %c0_40 = arith.constant 0 : index
      %c0_41 = arith.constant 0 : index
      %c0_42 = arith.constant 0 : index
      %53 = vector.load %arg4[%c0_40, %c0_41, %c0_42] : memref<1x1x1xf32, #tpu.memory_space<vmem>>, vector<1x1x1xf32>
      tpu.vector_store %arg4[%c0_40, %c0_41, %c0_42], %52 {strides = array<i32>} : memref<1x1x1xf32, #tpu.memory_space<vmem>>, vector<1x1x1xf32>,
    } else {
    }
    return
  }
  func.func @transform_0(%arg0: i32, %arg1: i32) -> (i32, i32, i32) {
    %c0_i32 = arith.constant 0 : i32
    %c0_i32_0 = arith.constant 0 : i32
    return %arg0, %arg1, %c0_i32 : i32, i32, i32
  }
  func.func @transform_1(%arg0: i32, %arg1: i32) -> (i32, i32, i32) {
    %c0_i32 = arith.constant 0 : i32
    %c0_i32_0 = arith.constant 0 : i32
    return %arg0, %arg1, %c0_i32 : i32, i32, i32
  }
  func.func @transform_2(%arg0: i32, %arg1: i32) -> (i32, i32, i32) {
    %c0_i32 = arith.constant 0 : i32
    %c0_i32_0 = arith.constant 0 : i32
    %c0_i32_1 = arith.constant 0 : i32
    return %arg0, %c0_i32, %c0_i32_0 : i32, i32, i32
  }
}

</mosaic_0001>

<bundles_post_ra>
// kernel: tpu_custom_call.1
= control target key start
LH: loop header
LB: loop body
LE: loop exit
PB: predicated region body
PF: predicated region fallthrough
CT: control target
= control target key end

     0   :  { %s479_s9 = smov 0   ;;  %s481_s10 = smov 0   ;;  %s544_s0 = inlined_call_operand.vmem [shape: f32[2,13,16], index: 0, kind: input, shape index: {}]   ;;  %s545_s1 = inlined_call_operand.vmem [shape: s32[2,16,1], index: 1, kind: input, shape index: {}]   ;;  %s546_s2 = inlined_call_operand.vmem [shape: f32[2,1,1], index: 2, kind: output, shape index: {}]  }
   0x1   :  { %s483_s11 = smov 0  }
   0x2 LB: > { %s24_s12 = sadd.s32 1, %s456_s10  ;;  %p389_p0 = scmp.ge.s32.totalorder %s460_s11, 1  ;;  %s460_s11 = sphi %s483_s11, %s12_s11   ;;  %s456_s10 = sphi %s481_s10, %s548_s10   ;;  %s452_s9 = sphi %s479_s9, %s547_s9  }
   0x3   : > { %p26_p1 = scmp.ge.s32.totalorder %s24_s12, 2  ;;  %p148_p2 = scmp.lt.s32.totalorder %s460_s11, 3 }
   0x5   : > { %s550_s12 = smov (%p26_p1, %s24_s12), 0  ;;  %p149_p3 = pnand %p389_p0, %p148_p2 }
   0x6   : > { %p182_p4 = scmp.lt.s32.totalorder (!%p149_p3), %s452_s9, 1  ;;  %vm208_vm0 = vcmask (!%p149_p3), 0   ;;  %v462_v0 = vmov (!%p149_p3), 0   ;;  %v463_v1 = vmov (!%p149_p3), 0.0   ;;  %vm217_vm1 = vcmask (!%p149_p3), 130048  }
   0x7   : > { %152 = sbr.rel (%p149_p3) target bundleno = 369 (0x171), region = 28  ;;  %426 = vset.pattern.permute.xlu1 (!%p149_p3), %v462_v0  ;;  %209 = vst.msk [vmem:[#allocation2] sm:$0x1] (!%p149_p3), %vm208_vm0, %v463_v1  ;;  %210 = vst.msk [vmem:[#allocation3] sm:$0x1] (!%p149_p3), %vm208_vm0, %v463_v1  ;;  %427 = vset.pattern.permute.xlu0 (!%p149_p3), %v462_v0  ;;  %vm273_vm2 = vcmask (!%p149_p3), 7168   ;;  %v238_v25 = vlaneseq (!%p149_p3) }
   0x9   : > { %v239_v29 = vand.u32 (!%p149_p3), 127, %v238_v25 }
   0xe   : > { %s552_s9 = smov (!%p182_p4, %s452_s9), 1  ;;  %v286_v18 = vld [vmem:[#allocation3] sm:$0x1]  ;;  %v272_v62 = vld [vmem:[#allocation2] sm:$0x1] }
   0xf   : > { %s398_s13 = sshll.u32 %s552_s9, 4  ;;  %s203_s22 = scalar_lea.vmem %s546_s2, %s552_s9 }
  0x10   : > { %s189_s16 = scalar_lea.vmem %s544_s0, %s398_s13  ;;  %s199_s19 = scalar_lea.vmem %s545_s1, %s398_s13 }
  0x11   : > { %v215_v2 = vld [vmem:[%s189_s16] sm:$0xff]  ;;  %v216_v3 = vld [vmem:[%s189_s16 + $0x8] sm:$0xff] }
  0x12   : > { %v508_v4 = vld [vmem:[%s199_s19] sm:$0xff]  ;;  %v218_v5 = vsel %vm217_vm1, %v215_v2, -inf  ;;  %v212_v6 = vld [vmem:[%s199_s19 + $0x8] sm:$0xff]  ;;  %v221_v8 = vsel %vm217_vm1, %v216_v3, -inf }
  0x13   : > { %241 = vperm.xlu1 %426, %v508_v4   ;;  %vm213_vm3 = vcmp.ne.s32.totalorder %v508_v4, 0  ;;  %219 = vmax.xlane.f32.xlu0 %v218_v5  ;;  %vm214_vm4 = vcmp.ne.s32.totalorder %v212_v6, 0 }
  0x14   : > { %v394_v7 = vsel %vm213_vm3, 1.0, %v463_v1  ;;  %v395_v10 = vsel %vm214_vm4, 1.0, %v463_v1 }
  0x15   : > { %v287_v9 = vsel %vm273_vm2, %v394_v7, 0.0  ;;  %v288_v11 = vsel %vm273_vm2, %v395_v10, 0.0 }
  0x16   : > { %v289_v12 = vadd.f32 %v288_v11, %v287_v9 }
  0x17   : > { %244 = vperm.xlu1 %426, %v212_v6   ;;  %222 = vmax.xlane.f32.xlu0 %v221_v8 }
  0x18   : > { %v290_v13 = vrot.slane %v289_v12, 4 }
  0x1a   : > { %v291_v14 = vadd.f32 %v290_v13, %v289_v12 }
  0x1c   : > { %v292_v15 = vrot.slane %v291_v14, 2 }
  0x1e   : > { %v293_v16 = vadd.f32 %v292_v15, %v291_v14 }
  0x20   : > { %v294_v17 = vrot.slane %v293_v16, 1 }
  0x22   : > { %v295_v19 = vadd.f32 %v294_v17, %v293_v16 }
  0x24   : > { %v296_v20 = vadd.f32 %v295_v19, %v286_v18 }
  0x26   : > { %297 = vst.msk [vmem:[#allocation3] sm:$0x1] %vm208_vm0, %v296_v20 }
  0x2d   : > { %v302_v59 = vld [vmem:[#allocation3] sm:$0x1] }
  0x92   : > { %v242_v28 = vpop.permute.xlu1 %241 }
  0x93   : > { %vm246_vm5 = vcmp.eq.s32.totalorder %v239_v29, %v242_v28 }
  0x94   : > { %v248_v32 = vsel %vm246_vm5, %v215_v2, 0.0 }
  0x95   : > { %v250_v34 = vsel %vm217_vm1, %v248_v32, 0.0 }
  0x96   : > { %v245_v30 = vpop.permute.xlu1 %244 }
  0x97   : > { %vm247_vm6 = vcmp.eq.s32.totalorder %v239_v29, %v245_v30 }
  0x98   : > { %v249_v36 = vsel %vm247_vm6, %v216_v3, 0.0 }
  0x99   : > { %v253_v38 = vsel %vm217_vm1, %v249_v36, 0.0 }
  0xa0   : > { %v220_v21 = vpop.xlane.xlu0 %219 }
  0xa1   : > { %v224_v22 = vsub.f32 %v215_v2, %v220_v21 }
  0xa3   : > { %v226_v23 = vmul.f32 1.442695, %v224_v22 }
  0xa4   : > { %v223_v24 = vpop.xlane.xlu0 %222 }
  0xa5   : > { %428 = vpow2.f32 %v226_v23  ;;  %v225_v26 = vsub.f32 %v216_v3, %v223_v24 }
  0xa7   : > { %v228_v27 = vmul.f32 1.442695, %v225_v26 }
  0xa9   : > { %430 = vpow2.f32 %v228_v27 }
  0xaf   : > { %v429_v31 = vpop.eup %428 }
  0xb0   : > { %v230_v33 = vsel %vm217_vm1, %v429_v31, 0.0 }
  0xb1   : > { %231 = vadd.xlane.f32.xlu0 %v230_v33 }
  0xb3   : > { %v431_v35 = vpop.eup %430 }
  0xb4   : > { %v233_v37 = vsel %vm217_vm1, %v431_v35, 0.0 }
  0xb5   : > { %234 = vadd.xlane.f32.xlu1 %v233_v37  ;;  %251 = vadd.xlane.f32.xlu0 %v250_v34 }
  0xb9   : > { %254 = vadd.xlane.f32.xlu0 %v253_v38 }
 0x13e   : > { %v232_v39 = vpop.xlane.xlu0 %231 }
 0x13f   : > { %432 = vlog2.f32 %v232_v39 }
 0x142   : > { %v235_v40 = vpop.xlane.xlu1 %234  ;;  %v252_v43 = vpop.xlane.xlu0 %251 }
 0x143   : > { %434 = vlog2.f32 %v235_v40 }
 0x144   : > { %436 = vrcp.f32 %v302_v59 }
 0x146   : > { %v255_v49 = vpop.xlane.xlu0 %254 }
 0x149   : > { %v433_v41 = vpop.eup %432 }
 0x14a   : > { %v259_v42 = vmul.f32 0.6931472, %v433_v41 }
 0x14c   : > { %v262_v44 = vadd.f32 %v259_v42, %v220_v21 }
 0x14d   : > { %v435_v45 = vpop.eup %434 }
 0x14e   : > { %v261_v46 = vmul.f32 0.6931472, %v435_v45  ;;  %v264_v47 = vsub.f32 %v262_v44, %v252_v43  ;;  %v437_v1 = vpop.eup %436 }
 0x150   : > { %v263_v48 = vadd.f32 %v261_v46, %v223_v24  ;;  %v266_v50 = vsel %vm213_vm3, %v264_v47, 0.0 }
 0x151   : > { %v274_v53 = vsel %vm273_vm2, %v266_v50, 0.0 }
 0x152   : > { %v265_v51 = vsub.f32 %v263_v48, %v255_v49 }
 0x154   : > { %v267_v52 = vsel %vm214_vm4, %v265_v51, 0.0 }
 0x155   : > { %v275_v54 = vsel %vm273_vm2, %v267_v52, 0.0 }
 0x156   : > { %v276_v55 = vadd.f32 %v275_v54, %v274_v53 }
 0x158   : > { %v277_v56 = vrot.slane %v276_v55, 4 }
 0x15a   : > { %v278_v57 = vadd.f32 %v277_v56, %v276_v55 }
 0x15c   : > { %v279_v58 = vrot.slane %v278_v57, 2 }
 0x15e   : > { %v280_v60 = vadd.f32 %v279_v58, %v278_v57 }
 0x160   : > { %v281_v61 = vrot.slane %v280_v60, 1 }
 0x162   : > { %v282_v63 = vadd.f32 %v281_v61, %v280_v60 }
 0x164   : > { %v283_v0 = vadd.f32 %v282_v63, %v272_v62 }
 0x166   : > { %285 = vst.msk [vmem:[#allocation2] sm:$0x1] %vm208_vm0, %v283_v0 }
 0x16d   : > { %v301_v2 = vld [vmem:[#allocation2] sm:$0x1] }
 0x16e   : > { %v304_v3 = vmul.f32 %v437_v1, %v301_v2 }
 0x170   : > { %305 = vst.msk [vmem:[%s203_s22] sm:$0x1] %vm208_vm0, %v304_v3 }
 0x171 PF: > { %s12_s11 = sadd.s32 1, %s460_s11   ;;  %s547_s9 = smov %s456_s10 }
 0x172   : > { %p9_p5 = scmp.ge.s32.totalorder %s12_s11, 4   ;;  %s548_s10 = smov %s550_s12 }
 0x174   :  { %11 = sbr.rel (!%p9_p5) target bundleno = 2 (0x2), region = 69 }

</bundles_post_ra>
